<compile_context>
chip_gen: v7x
topology: tpu7x:2x2x1
jax: 0.10.0
libtpu: 0.0.40
codegen_flags: <defaults>
</compile_context>

<pallas_src>
import functools

import jax
import jax.numpy as jnp
from jax.experimental import pallas as pl
from jax.experimental.pallas import tpu as pltpu

_NUM_CORES = 2        # sharded across TCs on v7x; runs serially (no cost) on v5e/v6e
_MAX_BLOCK_ROWS = 512  # 512x128xf32 = 256 KiB per input per buffer


def _round_up(v, m):
    return (v + m - 1) // m * m


def _loss_sums_kernel(x_ref, z_ref, acc_ref):
    # acc_ref: (4, 8, 128) resident per-core accumulator (lane-dense).
    # Zero it on the first step of this core's "arbitrary" axis.
    @pl.when(pl.program_id(1) == 0)
    def _():
        acc_ref[...] = jnp.zeros_like(acc_ref)

    x = x_ref[...].astype(jnp.float32)   # logits
    z = z_ref[...].astype(jnp.float32)   # targets

    # Shared transcendental: e = exp(-|x|) feeds both BCE's log term and sigmoid.
    e = jnp.exp(-jnp.abs(x))
    # Numerically-stable BCEWithLogits per element: max(x,0) - x*z + log1p(exp(-|x|))
    bce = jnp.maximum(x, 0.0) - x * z + jnp.log1p(e)
    # sigmoid(x) = 1/(1+e) for x>=0, e/(1+e) for x<0  (exact reciprocal for accuracy).
    sig = jnp.where(x >= 0.0, 1.0, e) * pl.reciprocal(1.0 + e, approx=False)
    # Exact float equality matches the PyTorch reference `(targets == 1).float()`.
    jt = (z == 1.0).astype(jnp.float32)

    def fold(v):
        # (block_rows, 128) -> (8, 128) partial sum: pure sublane-aligned VPU adds,
        # no cross-lane XLU work inside the streaming loop.
        return jnp.sum(v.reshape(-1, 8, 128), axis=0)

    acc_ref[0] += fold(bce)        # sum of per-element BCE
    acc_ref[1] += fold(sig)        # sum of sigmoid(outputs)
    acc_ref[2] += fold(jt)         # sum of jaccard_target
    acc_ref[3] += fold(sig * jt)   # intersection


def _loss_partial_sums(x2, z2, *, block_rows, num_cores):
    rows, lanes = x2.shape
    assert lanes == 128
    steps_per_core = rows // (num_cores * block_rows)
    assert steps_per_core * num_cores * block_rows == rows

    def in_map(c, i):
        return (c * steps_per_core + i, 0)

    in_spec = pl.BlockSpec((block_rows, 128), in_map)
    # Per-core lane-dense partial sums: (num_cores, 4, 8, 128); leading dim squeezed
    # in the kernel view, block stays resident across the "arbitrary" axis.
    out_spec = pl.BlockSpec((None, 4, 8, 128), lambda c, i: (c, 0, 0, 0))

    return pl.pallas_call(
        _loss_sums_kernel,
        out_shape=jax.ShapeDtypeStruct((num_cores, 4, 8, 128), jnp.float32),
        grid_spec=pltpu.PrefetchScalarGridSpec(
            num_scalar_prefetch=0,
            grid=(num_cores, steps_per_core),
            in_specs=[in_spec, in_spec],
            out_specs=out_spec,
        ),
        compiler_params=pltpu.CompilerParams(
            dimension_semantics=("parallel", "arbitrary")),
    )(x2, z2)


@functools.partial(jax.jit, static_argnames=("jaccard_weight",))
def loss_binary(outputs, targets, jaccard_weight=0.3):
    """Matches LossBinary.forward for NCHW inputs. Returns a scalar f32.

    Accepts any float logits dtype (e.g. bf16) and any numeric targets dtype
    (e.g. int8/bool with {0,1} labels); everything is upcast to f32 in-kernel.
    """
    n = outputs.size
    x = outputs.reshape(-1)
    z = targets.reshape(-1)

    rows = -(-n // 128)
    block_rows = min(_MAX_BLOCK_ROWS, _round_up(rows, 8))
    padded_rows = _round_up(rows, _NUM_CORES * block_rows)
    pad = padded_rows * 128 - n

    # Neutral padding: logit = -100 -> sigmoid ~= 0 and BCE ~= 0; target = 0 -> no
    # jaccard contribution.  No in-kernel masking needed.
    x = jnp.pad(x, (0, pad), constant_values=-100.0)
    z = jnp.pad(z, (0, pad))
    x2 = x.reshape(padded_rows, 128)
    z2 = z.reshape(padded_rows, 128)

    partials = _loss_partial_sums(x2, z2, block_rows=block_rows,
                                  num_cores=_NUM_CORES)
    # Single cross-lane/sublane reduce, done once in the wrapper.
    s_bce, s_sig, s_jt, s_int = jnp.sum(partials, axis=(0, 2, 3))

    w = jaccard_weight
    loss = (1.0 - w) * (s_bce / n)  # BCEWithLogitsLoss default reduction = mean
    if w:
        eps = 1e-15
        union = s_sig + s_jt
        loss = loss - w * jnp.log((s_int + eps) / (union - s_int + eps))
    return loss


def _reference(outputs, targets, jaccard_weight=0.3):
    x = outputs.astype(jnp.float32)
    z = targets.astype(jnp.float32)
    bce = jnp.mean(jnp.maximum(x, 0.0) - x * z + jnp.log1p(jnp.exp(-jnp.abs(x))))
    loss = (1.0 - jaccard_weight) * bce
    eps = 1e-15
    jt = (z == 1.0).astype(jnp.float32)
    jo = jax.nn.sigmoid(x)
    inter = jnp.sum(jo * jt)
    union = jnp.sum(jo) + jnp.sum(jt)
    loss -= jaccard_weight * jnp.log((inter + eps) / (union - inter + eps))
    return loss


if __name__ == "__main__":
    key = jax.random.PRNGKey(0)
    k1, k2 = jax.random.split(key)
    B, C, H, W = 2, 4, 16, 16  # NCHW
    outputs = jax.random.normal(k1, (B, C, H, W), dtype=jnp.float32) * 2.0
    targets = (jax.random.uniform(k2, (B, C, H, W)) > 0.5).astype(jnp.float32)

    # 1) f32 inputs vs f32 reference (exact semantic match).
    loss = loss_binary(outputs, targets, jaccard_weight=0.3)
    jax.block_until_ready(loss)
    ref = _reference(outputs, targets, 0.3)
    assert jnp.allclose(loss, ref, rtol=1e-5, atol=1e-5), (loss, ref)

    # 2) Bandwidth-friendly dtypes: bf16 logits + int8 targets, upcast in-kernel.
    out_bf16 = outputs.astype(jnp.bfloat16)
    tgt_i8 = targets.astype(jnp.int8)
    loss2 = loss_binary(out_bf16, tgt_i8, jaccard_weight=0.3)
    jax.block_until_ready(loss2)
    ref2 = _reference(out_bf16.astype(jnp.float32), tgt_i8.astype(jnp.float32), 0.3)
    assert jnp.allclose(loss2, ref2, rtol=1e-5, atol=1e-5), (loss2, ref2)

    # 3) Non-multiple-of-128 shape exercises the neutral-padding tail path.
    k3, k4 = jax.random.split(k2)
    odd_out = jax.random.normal(k3, (3, 5, 7, 11), dtype=jnp.float32)
    odd_tgt = (jax.random.uniform(k4, (3, 5, 7, 11)) > 0.5).astype(jnp.float32)
    loss3 = loss_binary(odd_out, odd_tgt, jaccard_weight=0.3)
    jax.block_until_ready(loss3)
    ref3 = _reference(odd_out, odd_tgt, 0.3)
    assert jnp.allclose(loss3, ref3, rtol=1e-5, atol=1e-5), (loss3, ref3)

    print("KERNEL_OK")
</pallas_src>

<mosaic_0001>
module attributes {stable_mosaic.version = 11 : i64} {
  func.func @_loss_sums_kernel(%arg0: i32, %arg1: i32, %arg2: memref<16x128xf32, #tpu.memory_space<vmem>>, %arg3: memref<16x128xf32, #tpu.memory_space<vmem>>, %arg4: memref<1x4x8x128xf32, #tpu.memory_space<vmem>>) attributes {dimension_semantics = [#tpu.dimension_semantics<parallel>, #tpu.dimension_semantics<arbitrary>], iteration_bounds = array<i64: 2, 1>, scalar_prefetch = 0 : i64, scratch_operands = 0 : i64, tpu.core_type = #tpu.core_type<tc>, window_params = [{transform_indices = @transform_0, window_bounds = array<i64: 16, 128>}, {transform_indices = @transform_1, window_bounds = array<i64: 16, 128>}, {transform_indices = @transform_2, window_bounds = array<i64: 1, 4, 8, 128>}]} {
    %c0_i32 = arith.constant 0 : i32
    %0 = arith.cmpi eq, %arg1, %c0_i32 : i32
    %1 = arith.extui %0 : i1 to i32
    %c0_i32_0 = arith.constant 0 : i32
    %2 = arith.cmpi ne, %1, %c0_i32_0 : i32
    scf.if %2 {
      %cst_42 = arith.constant 0.000000e+00 : f32
      %60 = vector.broadcast %cst_42 : f32 to vector<4x8x128xf32>
      %c0_43 = arith.constant 0 : index
      %c0_44 = arith.constant 0 : index
      %c0_45 = arith.constant 0 : index
      %c0_46 = arith.constant 0 : index
      %61 = vector.load %arg4[%c0_43, %c0_44, %c0_45, %c0_46] : memref<1x4x8x128xf32, #tpu.memory_space<vmem>>, vector<1x4x8x128xf32>
      %62 = vector.shape_cast %61 : vector<1x4x8x128xf32> to vector<4x8x128xf32>
      %63 = vector.shape_cast %60 : vector<4x8x128xf32> to vector<1x4x8x128xf32>
      tpu.vector_store %arg4[%c0_43, %c0_44, %c0_45, %c0_46], %63 {strides = array<i32>} : memref<1x4x8x128xf32, #tpu.memory_space<vmem>>, vector<1x4x8x128xf32>,
    } else {
    }
    %c0 = arith.constant 0 : index
    %c0_1 = arith.constant 0 : index
    %3 = vector.load %arg2[%c0, %c0_1] : memref<16x128xf32, #tpu.memory_space<vmem>>, vector<16x128xf32>
    %c0_2 = arith.constant 0 : index
    %c0_3 = arith.constant 0 : index
    %4 = vector.load %arg3[%c0_2, %c0_3] : memref<16x128xf32, #tpu.memory_space<vmem>>, vector<16x128xf32>
    %5 = math.absf %3 : vector<16x128xf32>
    %cst = arith.constant 0.000000e+00 : f32
    %6 = vector.broadcast %cst : f32 to vector<16x128xf32>
    %7 = arith.subf %6, %5 : vector<16x128xf32>
    %8 = math.exp %7 : vector<16x128xf32>
    %cst_4 = arith.constant 0.000000e+00 : f32
    %9 = vector.broadcast %cst_4 : f32 to vector<16x128xf32>
    %10 = arith.maximumf %3, %9 : vector<16x128xf32>
    %11 = arith.mulf %3, %4 : vector<16x128xf32>
    %12 = arith.subf %10, %11 : vector<16x128xf32>
    %13 = math.log1p %8 : vector<16x128xf32>
    %14 = arith.addf %12, %13 : vector<16x128xf32>
    %cst_5 = arith.constant 0.000000e+00 : f32
    %15 = vector.broadcast %cst_5 : f32 to vector<16x128xf32>
    %16 = arith.cmpf oge, %3, %15 : vector<16x128xf32>
    %cst_6 = arith.constant 1.000000e+00 : f32
    %17 = vector.broadcast %cst_6 : f32 to vector<16x128xf32>
    %18 = arith.select %16, %17, %8 : vector<16x128xi1>, vector<16x128xf32>
    %cst_7 = arith.constant 1.000000e+00 : f32
    %19 = vector.broadcast %cst_7 : f32 to vector<16x128xf32>
    %20 = arith.addf %19, %8 : vector<16x128xf32>
    %21 = tpu.reciprocal %20 : vector<16x128xf32> -> vector<16x128xf32>
    %22 = arith.mulf %18, %21 : vector<16x128xf32>
    %cst_8 = arith.constant 1.000000e+00 : f32
    %23 = vector.broadcast %cst_8 : f32 to vector<16x128xf32>
    %24 = arith.cmpf oeq, %4, %23 : vector<16x128xf32>
    %25 = arith.extui %24 : vector<16x128xi1> to vector<16x128xi32>
    %26 = arith.sitofp %25 : vector<16x128xi32> to vector<16x128xf32>
    %c0_9 = arith.constant 0 : index
    %c0_10 = arith.constant 0 : index
    %c0_11 = arith.constant 0 : index
    %c0_12 = arith.constant 0 : index
    %27 = vector.load %arg4[%c0_9, %c0_10, %c0_11, %c0_12] : memref<1x4x8x128xf32, #tpu.memory_space<vmem>>, vector<1x1x8x128xf32>
    %28 = vector.shape_cast %27 : vector<1x1x8x128xf32> to vector<8x128xf32>
    %29 = vector.shape_cast %14 : vector<16x128xf32> to vector<2x8x128xf32>
    %cst_13 = arith.constant dense<0.000000e+00> : vector<8x128xf32>
    %30 = vector.multi_reduction <add>, %29, %cst_13 [0] : vector<2x8x128xf32> to vector<8x128xf32>
    %31 = arith.addf %28, %30 : vector<8x128xf32>
    %c0_14 = arith.constant 0 : index
    %c0_15 = arith.constant 0 : index
    %c0_16 = arith.constant 0 : index
    %c0_17 = arith.constant 0 : index
    %32 = vector.load %arg4[%c0_14, %c0_15, %c0_16, %c0_17] : memref<1x4x8x128xf32, #tpu.memory_space<vmem>>, vector<1x1x8x128xf32>
    %33 = vector.shape_cast %32 : vector<1x1x8x128xf32> to vector<8x128xf32>
    %34 = vector.shape_cast %31 : vector<8x128xf32> to vector<1x1x8x128xf32>
    tpu.vector_store %arg4[%c0_14, %c0_15, %c0_16, %c0_17], %34 {strides = array<i32>} : memref<1x4x8x128xf32, #tpu.memory_space<vmem>>, vector<1x1x8x128xf32>,
    %c0_18 = arith.constant 0 : index
    %c1 = arith.constant 1 : index
    %c0_19 = arith.constant 0 : index
    %c0_20 = arith.constant 0 : index
    %35 = vector.load %arg4[%c0_18, %c1, %c0_19, %c0_20] : memref<1x4x8x128xf32, #tpu.memory_space<vmem>>, vector<1x1x8x128xf32>
    %36 = vector.shape_cast %35 : vector<1x1x8x128xf32> to vector<8x128xf32>
    %37 = vector.shape_cast %22 : vector<16x128xf32> to vector<2x8x128xf32>
    %cst_21 = arith.constant dense<0.000000e+00> : vector<8x128xf32>
    %38 = vector.multi_reduction <add>, %37, %cst_21 [0] : vector<2x8x128xf32> to vector<8x128xf32>
    %39 = arith.addf %36, %38 : vector<8x128xf32>
    %c0_22 = arith.constant 0 : index
    %c1_23 = arith.constant 1 : index
    %c0_24 = arith.constant 0 : index
    %c0_25 = arith.constant 0 : index
    %40 = vector.load %arg4[%c0_22, %c1_23, %c0_24, %c0_25] : memref<1x4x8x128xf32, #tpu.memory_space<vmem>>, vector<1x1x8x128xf32>
    %41 = vector.shape_cast %40 : vector<1x1x8x128xf32> to vector<8x128xf32>
    %42 = vector.shape_cast %39 : vector<8x128xf32> to vector<1x1x8x128xf32>
    tpu.vector_store %arg4[%c0_22, %c1_23, %c0_24, %c0_25], %42 {strides = array<i32>} : memref<1x4x8x128xf32, #tpu.memory_space<vmem>>, vector<1x1x8x128xf32>,
    %c0_26 = arith.constant 0 : index
    %c2 = arith.constant 2 : index
    %c0_27 = arith.constant 0 : index
    %c0_28 = arith.constant 0 : index
    %43 = vector.load %arg4[%c0_26, %c2, %c0_27, %c0_28] : memref<1x4x8x128xf32, #tpu.memory_space<vmem>>, vector<1x1x8x128xf32>
    %44 = vector.shape_cast %43 : vector<1x1x8x128xf32> to vector<8x128xf32>
    %45 = vector.shape_cast %26 : vector<16x128xf32> to vector<2x8x128xf32>
    %cst_29 = arith.constant dense<0.000000e+00> : vector<8x128xf32>
    %46 = vector.multi_reduction <add>, %45, %cst_29 [0] : vector<2x8x128xf32> to vector<8x128xf32>
    %47 = arith.addf %44, %46 : vector<8x128xf32>
    %c0_30 = arith.constant 0 : index
    %c2_31 = arith.constant 2 : index
    %c0_32 = arith.constant 0 : index
    %c0_33 = arith.constant 0 : index
    %48 = vector.load %arg4[%c0_30, %c2_31, %c0_32, %c0_33] : memref<1x4x8x128xf32, #tpu.memory_space<vmem>>, vector<1x1x8x128xf32>
    %49 = vector.shape_cast %48 : vector<1x1x8x128xf32> to vector<8x128xf32>
    %50 = vector.shape_cast %47 : vector<8x128xf32> to vector<1x1x8x128xf32>
    tpu.vector_store %arg4[%c0_30, %c2_31, %c0_32, %c0_33], %50 {strides = array<i32>} : memref<1x4x8x128xf32, #tpu.memory_space<vmem>>, vector<1x1x8x128xf32>,
    %c0_34 = arith.constant 0 : index
    %c3 = arith.constant 3 : index
    %c0_35 = arith.constant 0 : index
    %c0_36 = arith.constant 0 : index
    %51 = vector.load %arg4[%c0_34, %c3, %c0_35, %c0_36] : memref<1x4x8x128xf32, #tpu.memory_space<vmem>>, vector<1x1x8x128xf32>
    %52 = vector.shape_cast %51 : vector<1x1x8x128xf32> to vector<8x128xf32>
    %53 = arith.mulf %22, %26 : vector<16x128xf32>
    %54 = vector.shape_cast %53 : vector<16x128xf32> to vector<2x8x128xf32>
    %cst_37 = arith.constant dense<0.000000e+00> : vector<8x128xf32>
    %55 = vector.multi_reduction <add>, %54, %cst_37 [0] : vector<2x8x128xf32> to vector<8x128xf32>
    %56 = arith.addf %52, %55 : vector<8x128xf32>
    %c0_38 = arith.constant 0 : index
    %c3_39 = arith.constant 3 : index
    %c0_40 = arith.constant 0 : index
    %c0_41 = arith.constant 0 : index
    %57 = vector.load %arg4[%c0_38, %c3_39, %c0_40, %c0_41] : memref<1x4x8x128xf32, #tpu.memory_space<vmem>>, vector<1x1x8x128xf32>
    %58 = vector.shape_cast %57 : vector<1x1x8x128xf32> to vector<8x128xf32>
    %59 = vector.shape_cast %56 : vector<8x128xf32> to vector<1x1x8x128xf32>
    tpu.vector_store %arg4[%c0_38, %c3_39, %c0_40, %c0_41], %59 {strides = array<i32>} : memref<1x4x8x128xf32, #tpu.memory_space<vmem>>, vector<1x1x8x128xf32>,
    return
  }
  func.func @transform_0(%arg0: i32, %arg1: i32) -> (i32, i32) {
    %c1_i32 = arith.constant 1 : i32
    %0 = arith.muli %arg0, %c1_i32 : i32
    %1 = arith.addi %0, %arg1 : i32
    %c0_i32 = arith.constant 0 : i32
    %c0_i32_0 = arith.constant 0 : i32
    return %1, %c0_i32 : i32, i32
  }
  func.func @transform_1(%arg0: i32, %arg1: i32) -> (i32, i32) {
    %c1_i32 = arith.constant 1 : i32
    %0 = arith.muli %arg0, %c1_i32 : i32
    %1 = arith.addi %0, %arg1 : i32
    %c0_i32 = arith.constant 0 : i32
    %c0_i32_0 = arith.constant 0 : i32
    return %1, %c0_i32 : i32, i32
  }
  func.func @transform_2(%arg0: i32, %arg1: i32) -> (i32, i32, i32, i32) {
    %c0_i32 = arith.constant 0 : i32
    %c0_i32_0 = arith.constant 0 : i32
    %c0_i32_1 = arith.constant 0 : i32
    %c0_i32_2 = arith.constant 0 : i32
    return %arg0, %c0_i32, %c0_i32_0, %c0_i32_1 : i32, i32, i32, i32
  }
}

</mosaic_0001>

<bundles_post_ra>
// kernel: loss_binary.1
= control target key start
LH: loop header
LB: loop body
LE: loop exit
PB: predicated region body
PF: predicated region fallthrough
CT: control target
= control target key end

     0   :  { %s451_s9 = smov 0   ;;  %s453_s10 = smov 0   ;;  %s493_s0 = inlined_call_operand.vmem [shape: f32[32,128], index: 0, kind: input, shape index: {}]   ;;  %s494_s1 = inlined_call_operand.vmem [shape: f32[32,128], index: 1, kind: input, shape index: {}]   ;;  %s495_s2 = inlined_call_operand.vmem [shape: f32[2,4,8,128], index: 2, kind: output, shape index: {}]  }
   0x1   :  { %s455_s11 = smov 0  }
   0x2 LB: > { %s24_s12 = sadd.s32 1, %s429_s10  ;;  %p356_p0 = scmp.ge.s32.totalorder %s433_s11, 1  ;;  %s433_s11 = sphi %s455_s11, %s12_s11   ;;  %s429_s10 = sphi %s453_s10, %s497_s10   ;;  %s425_s9 = sphi %s451_s9, %s496_s9  }
   0x3   : > { %p26_p1 = scmp.ge.s32.totalorder %s24_s12, 2  ;;  %p144_p2 = scmp.lt.s32.totalorder %s433_s11, 3 }
   0x5   : > { %s499_s12 = smov (%p26_p1, %s24_s12), 0  ;;  %p145_p3 = pnand %p356_p0, %p144_p2 }
   0x6   : > { %s357_s13 = sshll.u32 (!%p145_p3), %s425_s9, 1  ;;  %p189_p5 = scmp.lt.s32.totalorder (!%p145_p3), %s425_s9, 1  ;;  %v435_v10 = vmov (!%p145_p3), 0.0  }
   0x7   : > { %148 = sbr.rel (%p145_p3) target bundleno = 58 (0x3a), region = 28  ;;  %p175_p4 = scmp.lt.s32.totalorder (!%p145_p3), %s357_s13, 3 }
   0xe   : > { %s501_s13 = smov (!%p175_p4, %s357_s13), 3  ;;  %s503_s9 = smov (!%p189_p5, %s425_s9), 1 }
   0xf   : > { %s358_s14 = sshll.u32 %s501_s13, 3  ;;  %s373_s21 = sshll.u32 %s503_s9, 5 }
  0x10   : > { %s178_s17 = scalar_lea.vmem %s493_s0, %s358_s14  ;;  %s186_s20 = scalar_lea.vmem %s494_s1, %s358_s14 }
  0x11   : > { %v202_v0 = vld [vmem:[%s178_s17] sm:$0xff]  ;;  %v203_v1 = vld [vmem:[%s178_s17 + $0x8] sm:$0xff]  ;;  %s478_s24 = scalar_lea.vmem %s495_s2, %s373_s21 }
  0x12   : > { %v206_v2 = vand.u32 2147483647, %v202_v0  ;;  %v207_v3 = vand.u32 2147483647, %v203_v1  ;;  %v204_v4 = vld [vmem:[%s186_s20] sm:$0xff]  ;;  %v205_v5 = vld [vmem:[%s186_s20 + $0x8] sm:$0xff] }
  0x13   : > { %vm250_vm0 = vcmp.eq.f32.partialorder %v204_v4, 1.0  ;;  %vm251_vm1 = vcmp.eq.f32.partialorder %v205_v5, 1.0  ;;  %v214_v21 = vmax.f32 %v202_v0, 0.0  ;;  %v216_v22 = vmul.f32 %v204_v4, %v202_v0 }
  0x14   : > { %v208_v6 = vsub.f32 0.0, %v206_v2  ;;  %v209_v7 = vsub.f32 0.0, %v207_v3  ;;  %v363_v11 = vsel %vm250_vm0, 1.0, %v435_v10  ;;  %v364_v12 = vsel %vm251_vm1, 1.0, %v435_v10 }
  0x15   : > { %v267_v13 = vadd.f32 %v364_v12, %v363_v11  ;;  %v215_v25 = vmax.f32 %v203_v1, 0.0  ;;  %v217_v26 = vmul.f32 %v205_v5, %v203_v1  ;;  %vm240_vm2 = vcmp.ge.f32.partialorder %v202_v0, 0.0 }
  0x16   : > { %v210_v8 = vmul.f32 1.442695, %v208_v6  ;;  %v212_v9 = vmul.f32 1.442695, %v209_v7  ;;  %vm241_vm3 = vcmp.ge.f32.partialorder %v203_v1, 0.0  ;;  %v218_v30 = vsub.f32 %v214_v21, %v216_v22 }
  0x17   : > { %368 = vst [vmem:[%s478_s24 + $0x10] sm:$0xff] %v267_v13  ;;  %v219_v34 = vsub.f32 %v215_v25, %v217_v26 }
  0x18   : > { %399 = vpow2.f32 %v210_v8 }
  0x19   : > { %401 = vpow2.f32 %v212_v9 }
  0x22   : > { %v400_v14 = vpop.eup %399 }
  0x23   : > { %v402_v15 = vpop.eup %401  ;;  %v220_v16 = vadd.f32 1.0, %v400_v14  ;;  %v223_v18 = vmul.f32 -0.5, %v400_v14  ;;  %v226_v23 = vand.u32 2147483647, %v400_v14  ;;  %v242_v32 = vsel %vm240_vm2, 1.0, %v400_v14 }
  0x24   : > { %v229_v17 = vadd.f32 1.0, %v402_v15  ;;  %v232_v19 = vmul.f32 -0.5, %v402_v15  ;;  %v235_v27 = vand.u32 2147483647, %v402_v15  ;;  %v243_v36 = vsel %vm241_vm3, 1.0, %v402_v15 }
  0x25   : > { %403 = vlog2.f32 %v220_v16  ;;  %v224_v20 = vadd.f32 1.0, %v223_v18  ;;  %vm227_vm4 = vcmp.lt.f32.partialorder %v226_v23, 0.0004427343 }
  0x26   : > { %405 = vlog2.f32 %v229_v17  ;;  %v233_v24 = vadd.f32 1.0, %v232_v19  ;;  %vm236_vm5 = vcmp.lt.f32.partialorder %v235_v27, 0.0004427343 }
  0x27   : > { %407 = vrcp.f32 %v220_v16  ;;  %v225_v28 = vmul.f32 %v400_v14, %v224_v20 }
  0x28   : > { %409 = vrcp.f32 %v229_v17  ;;  %v234_v31 = vmul.f32 %v402_v15, %v233_v24 }
  0x2f   : > { %v404_v29 = vpop.eup %403 }
  0x30   : > { %v406_v33 = vpop.eup %405  ;;  %v222_v35 = vmul.f32 0.6931472, %v404_v29 }
  0x31   : > { %v408_v37 = vpop.eup %407  ;;  %v231_v38 = vmul.f32 0.6931472, %v406_v33 }
  0x32   : > { %v410_v39 = vpop.eup %409  ;;  %v228_v40 = vsel %vm227_vm4, %v225_v28, %v222_v35  ;;  %v248_v41 = vmul.f32 %v408_v37, %v242_v32 }
  0x33   : > { %v237_v42 = vsel %vm236_vm5, %v234_v31, %v231_v38  ;;  %v238_v43 = vadd.f32 %v228_v40, %v218_v30  ;;  %v249_v44 = vmul.f32 %v410_v39, %v243_v36 }
  0x34   : > { %v239_v45 = vadd.f32 %v237_v42, %v219_v34  ;;  %v272_v46 = vmul.f32 %v363_v11, %v248_v41 }
  0x35   : > { %v262_v47 = vadd.f32 %v249_v44, %v248_v41  ;;  %v273_v48 = vmul.f32 %v364_v12, %v249_v44 }
  0x36   : > { %v257_v49 = vadd.f32 %v239_v45, %v238_v43 }
  0x37   : > { %v274_v50 = vadd.f32 %v273_v48, %v272_v46  ;;  %366 = vst [vmem:[%s478_s24 + $0x8] sm:$0xff] %v262_v47 }
  0x38   : > { %259 = vst [vmem:[%s478_s24] sm:$0xff] %v257_v49 }
  0x39   : > { %370 = vst [vmem:[%s478_s24 + $0x18] sm:$0xff] %v274_v50 }
  0x3a PF: > { %s12_s11 = sadd.s32 1, %s433_s11   ;;  %s496_s9 = smov %s429_s10 }
  0x3b   : > { %p9_p6 = scmp.ge.s32.totalorder %s12_s11, 4   ;;  %s497_s10 = smov %s499_s12 }
  0x3d   :  { %11 = sbr.rel (!%p9_p6) target bundleno = 2 (0x2), region = 68 }

</bundles_post_ra>
